<compile_context>
chip_gen: v7x
topology: tpu7x:2x2x1
jax: 0.10.0
libtpu: 0.0.40
codegen_flags: <defaults>
</compile_context>

<pallas_src>
import functools

import jax
import jax.numpy as jnp
from jax.experimental import pallas as pl
from jax.experimental.pallas import tpu as pltpu

# ---- small, forward-consistent configuration -------------------------------
NUM_SEGMENTS = 8      # num_segments
NUM_CHANNELS = 3      # num_channels
NUM_CLASS    = 16     # num_class
D_RGB        = 128    # stand-in for base_model feature_dim (1024 for BNInception)
D_POSE       = 64     # stand-in for PoseModel.feature_dim
H = W        = 16     # spatial (stand-in for 224)
BATCH        = 2      # number of videos
LANES        = 128    # TPU lane width


# ---- Pallas kernel: new_fc(concat(rgb, pose)) + avg consensus ---------------
def _late_fusion_kernel(rgb_ref, pose_ref, w_rgb_ref, w_pose_ref, b_ref, out_ref,
                        *, num_segments):
    # rgb_ref:  (TB*T, D_rgb)  bf16     w_rgb_ref:  (D_rgb,  NP) bf16
    # pose_ref: (TB*T, D_pose) bf16     w_pose_ref: (D_pose, NP) bf16
    # b_ref:    (1, NP) f32             out_ref:    (TB, NP) f32
    #
    # torch.cat((rgb, pose), dim=1) @ W  ==  rgb @ W_rgb + pose @ W_pose
    logits = jnp.dot(rgb_ref[...], w_rgb_ref[...],
                     preferred_element_type=jnp.float32)
    logits = logits + jnp.dot(pose_ref[...], w_pose_ref[...],
                              preferred_element_type=jnp.float32)
    tb = out_ref.shape[0]
    logits = logits.reshape(tb, num_segments, logits.shape[-1])   # (TB, T, NP)
    # 'avg' consensus over the segment axis; bias added after the mean
    # (mean is linear -> mathematically identical, T x less VPU work).
    out_ref[...] = (jnp.mean(logits, axis=1) + b_ref[...]).astype(out_ref.dtype)


def _pick_videos_per_block(num_videos, num_segments):
    """Videos per grid step (tile-aligned, roofline-friendly blocks)."""
    rows = num_videos * num_segments
    # Small problem: one grid step with full-extent blocks (exempt from the
    # (8,128) block rule) -> no degenerate tiles, no batch padding.
    if num_videos < 16 or rows <= 512:
        return num_videos
    # Large problem: target ~512 feature rows per step; tb a multiple of 8 so
    # the (tb, 128) f32 output tile and bf16 feature tiles are sublane-aligned.
    tb = max(8, (512 // num_segments) // 8 * 8)
    tb = min(tb, (num_videos // 8) * 8)
    return tb


def late_fusion_forward(feat_rgb, feat_pose, w_rgb_pad, w_pose_pad, bias_pad,
                        num_segments, num_class):
    """feat_rgb: (B*T, D_rgb) bf16, feat_pose: (B*T, D_pose) bf16.
       w_*_pad: bf16 weight halves padded to NP lanes; bias_pad: (1, NP) f32.
       Returns (B, 1, num_class) float32 (avg consensus, keepdim)."""
    n, d_rgb = feat_rgb.shape
    d_pose = feat_pose.shape[1]
    npad = w_rgb_pad.shape[1]
    b = n // num_segments

    tb = _pick_videos_per_block(b, num_segments)
    b_pad = pl.cdiv(b, tb) * tb
    if b_pad != b:                      # only for large, non-multiple batches
        pad_rows = (b_pad - b) * num_segments
        feat_rgb = jnp.pad(feat_rgb, ((0, pad_rows), (0, 0)))
        feat_pose = jnp.pad(feat_pose, ((0, pad_rows), (0, 0)))

    rows_blk = tb * num_segments
    # VMEM budget: double-buffered feature/output blocks + resident weights.
    block_bytes = (2 * rows_blk * d_rgb * 2 + 2 * rows_blk * d_pose * 2
                   + 2 * d_rgb * npad * 2 + 2 * d_pose * npad * 2
                   + 2 * npad * 4 + 2 * tb * npad * 4)
    vmem_limit = int(min(max(3 * block_bytes, 32 * 1024 * 1024),
                         60 * 1024 * 1024))   # safe on v7x's 64 MiB physical

    kernel = functools.partial(_late_fusion_kernel, num_segments=num_segments)

    out = pl.pallas_call(
        kernel,
        out_shape=jax.ShapeDtypeStruct((b_pad, npad), jnp.float32),
        grid_spec=pltpu.PrefetchScalarGridSpec(
            num_scalar_prefetch=0,
            grid=(b_pad // tb,),
            in_specs=[
                # streamed feature blocks (the only large HBM traffic)
                pl.BlockSpec((rows_blk, d_rgb), lambda i: (i, 0)),
                pl.BlockSpec((rows_blk, d_pose), lambda i: (i, 0)),
                # weights / bias: constant block index -> VMEM-resident
                pl.BlockSpec((d_rgb, npad), lambda i: (0, 0)),
                pl.BlockSpec((d_pose, npad), lambda i: (0, 0)),
                pl.BlockSpec((1, npad), lambda i: (0, 0)),
            ],
            out_specs=pl.BlockSpec((tb, npad), lambda i: (i, 0)),
        ),
        compiler_params=pltpu.CompilerParams(
            dimension_semantics=("parallel",),
            vmem_limit_bytes=vmem_limit),
    )(feat_rgb, feat_pose, w_rgb_pad, w_pose_pad, bias_pad)

    # drop class / batch padding, re-add keepdim consensus axis
    return out[:b, :num_class].reshape(b, 1, num_class)


# ---- stand-in backbones (glue, plain JAX) -----------------------------------
# TODO(synk): the real BNInception/GSF base_model and the external PoseModel
# cannot be reproduced here; deterministic GAP + linear stand-ins produce
# features of the correct shape (the module's Dropout head is identity at
# inference).  They emit bf16 directly so no extra cast pass over the features.
def standin_backbone(x_nchw, w_proj):
    pooled = jnp.mean(x_nchw, axis=(2, 3))           # (N, C) global avg pool
    return (pooled @ w_proj).astype(jnp.bfloat16)    # (N, D) bf16 features


def video_model_late_fusion_forward(input_rgb, params):
    # input_rgb: (B, T*C, H, W)  (PyTorch NCHW convention)
    x = input_rgb.reshape((-1, NUM_CHANNELS) + input_rgb.shape[-2:])  # (B*T,C,H,W)
    feat_rgb = standin_backbone(x, params["w_rgb_proj"])    # base_model(...)
    feat_pose = standin_backbone(x, params["w_pose_proj"])  # pose_model(...)
    # torch.cat((rgb, pose), dim=1) + new_fc are fused in-kernel as two
    # accumulating matmuls against the pre-split weight halves.
    return late_fusion_forward(feat_rgb, feat_pose,
                               params["w_rgb_fc"], params["w_pose_fc"],
                               params["b_fc_pad"], NUM_SEGMENTS, NUM_CLASS)


def init_params(key):
    k1, k2, k3 = jax.random.split(key, 3)
    # new_fc: normal_(weight, 0, 0.001), constant_(bias, 0)  (stored transposed)
    w_fc = 0.001 * jax.random.normal(k1, (D_RGB + D_POSE, NUM_CLASS), jnp.float32)
    b_fc = jnp.zeros((NUM_CLASS,), jnp.float32)
    # One-time preprocessing (hoisted out of the forward path): split the fc
    # weight into rgb/pose halves, cast to bf16, pad class dim to 128 lanes.
    npad = max(LANES, pl.cdiv(NUM_CLASS, LANES) * LANES)
    w_rgb_fc = jnp.zeros((D_RGB, npad), jnp.bfloat16)
    w_rgb_fc = w_rgb_fc.at[:, :NUM_CLASS].set(w_fc[:D_RGB].astype(jnp.bfloat16))
    w_pose_fc = jnp.zeros((D_POSE, npad), jnp.bfloat16)
    w_pose_fc = w_pose_fc.at[:, :NUM_CLASS].set(w_fc[D_RGB:].astype(jnp.bfloat16))
    b_fc_pad = jnp.zeros((1, npad), jnp.float32)
    b_fc_pad = b_fc_pad.at[:, :NUM_CLASS].set(b_fc)
    # stand-in backbone projections
    w_rgb_proj = jax.random.normal(k2, (NUM_CHANNELS, D_RGB), jnp.float32) * 0.1
    w_pose_proj = jax.random.normal(k3, (NUM_CHANNELS, D_POSE), jnp.float32) * 0.1
    return dict(w_fc=w_fc, b_fc=b_fc,
                w_rgb_fc=w_rgb_fc, w_pose_fc=w_pose_fc, b_fc_pad=b_fc_pad,
                w_rgb_proj=w_rgb_proj, w_pose_proj=w_pose_proj)


if __name__ == "__main__":
    key = jax.random.PRNGKey(0)
    k_in, k_p = jax.random.split(key)
    params = init_params(k_p)

    # (B, T*C, H, W), the usual TSN stacked-frames layout that .view() unpacks
    input_rgb = jax.random.normal(
        k_in, (BATCH, NUM_SEGMENTS * NUM_CHANNELS, H, W), jnp.float32)

    out = video_model_late_fusion_forward(input_rgb, params)
    out = jax.block_until_ready(out)
    assert out.shape == (BATCH, 1, NUM_CLASS)

    # cross-check against a plain-JAX reference of the same math
    # (bf16 operands + f32 accumulation, like the kernel; bias before the mean
    #  is mathematically identical to bias after the mean)
    x = input_rgb.reshape((-1, NUM_CHANNELS, H, W))
    fr = standin_backbone(x, params["w_rgb_proj"]).astype(jnp.float32)
    fp = standin_backbone(x, params["w_pose_proj"]).astype(jnp.float32)
    comb = jnp.concatenate([fr, fp], axis=1)
    w_bf = params["w_fc"].astype(jnp.bfloat16).astype(jnp.float32)
    logits = comb @ w_bf + params["b_fc"]
    ref = logits.reshape(BATCH, NUM_SEGMENTS, NUM_CLASS).mean(axis=1, keepdims=True)
    assert jnp.allclose(out, ref, atol=1e-4, rtol=1e-4), (
        float(jnp.max(jnp.abs(out - ref))))

    print("KERNEL_OK")
</pallas_src>

<mosaic_0001>
module attributes {stable_mosaic.version = 11 : i64} {
  func.func @_late_fusion_kernel(%arg0: i32, %arg1: memref<16x128xbf16, #tpu.memory_space<vmem>>, %arg2: memref<16x64xbf16, #tpu.memory_space<vmem>>, %arg3: memref<128x128xbf16, #tpu.memory_space<vmem>>, %arg4: memref<64x128xbf16, #tpu.memory_space<vmem>>, %arg5: memref<1x128xf32, #tpu.memory_space<vmem>>, %arg6: memref<2x128xf32, #tpu.memory_space<vmem>>) attributes {dimension_semantics = [#tpu.dimension_semantics<parallel>], iteration_bounds = array<i64: 1>, scalar_prefetch = 0 : i64, scratch_operands = 0 : i64, tpu.core_type = #tpu.core_type<tc>, window_params = [{transform_indices = @transform_0, window_bounds = array<i64: 16, 128>}, {transform_indices = @transform_1, window_bounds = array<i64: 16, 64>}, {pipeline_mode = #tpu.pipeline_mode<synchronous>, transform_indices = @transform_2, window_bounds = array<i64: 128, 128>}, {pipeline_mode = #tpu.pipeline_mode<synchronous>, transform_indices = @transform_3, window_bounds = array<i64: 64, 128>}, {pipeline_mode = #tpu.pipeline_mode<synchronous>, transform_indices = @transform_4, window_bounds = array<i64: 1, 128>}, {transform_indices = @transform_5, window_bounds = array<i64: 2, 128>}]} {
    %c0 = arith.constant 0 : index
    %c0_0 = arith.constant 0 : index
    %0 = vector.load %arg1[%c0, %c0_0] : memref<16x128xbf16, #tpu.memory_space<vmem>>, vector<16x128xbf16>
    %c0_1 = arith.constant 0 : index
    %c0_2 = arith.constant 0 : index
    %1 = vector.load %arg3[%c0_1, %c0_2] : memref<128x128xbf16, #tpu.memory_space<vmem>>, vector<128x128xbf16>
    %cst = arith.constant dense<0.000000e+00> : vector<16x128xf32>
    %2 = tpu.matmul %0, %1, %cst {dimension_numbers = #tpu.dot_dimension_numbers<[1], [0], [0], [1], [0, 0, 1, 1], [], []>} : vector<16x128xbf16>, vector<128x128xbf16>, vector<16x128xf32> -> vector<16x128xf32>
    %c0_3 = arith.constant 0 : index
    %c0_4 = arith.constant 0 : index
    %3 = vector.load %arg2[%c0_3, %c0_4] : memref<16x64xbf16, #tpu.memory_space<vmem>>, vector<16x64xbf16>
    %c0_5 = arith.constant 0 : index
    %c0_6 = arith.constant 0 : index
    %4 = vector.load %arg4[%c0_5, %c0_6] : memref<64x128xbf16, #tpu.memory_space<vmem>>, vector<64x128xbf16>
    %cst_7 = arith.constant dense<0.000000e+00> : vector<16x128xf32>
    %5 = tpu.matmul %3, %4, %cst_7 {dimension_numbers = #tpu.dot_dimension_numbers<[1], [0], [0], [1], [0, 0, 1, 1], [], []>} : vector<16x64xbf16>, vector<64x128xbf16>, vector<16x128xf32> -> vector<16x128xf32>
    %6 = arith.addf %2, %5 : vector<16x128xf32>
    %7 = vector.shape_cast %6 : vector<16x128xf32> to vector<2x8x128xf32>
    %cst_8 = arith.constant dense<0.000000e+00> : vector<2x128xf32>
    %8 = vector.multi_reduction <add>, %7, %cst_8 [1] : vector<2x8x128xf32> to vector<2x128xf32>
    %cst_9 = arith.constant 8.000000e+00 : f32
    %9 = vector.broadcast %cst_9 : f32 to vector<2x128xf32>
    %10 = arith.divf %8, %9 : vector<2x128xf32>
    %c0_10 = arith.constant 0 : index
    %c0_11 = arith.constant 0 : index
    %11 = vector.load %arg5[%c0_10, %c0_11] : memref<1x128xf32, #tpu.memory_space<vmem>>, vector<1x128xf32>
    %12 = vector.broadcast %11 : vector<1x128xf32> to vector<2x128xf32>
    %13 = arith.addf %10, %12 : vector<2x128xf32>
    %c0_12 = arith.constant 0 : index
    %c0_13 = arith.constant 0 : index
    %14 = vector.load %arg6[%c0_12, %c0_13] : memref<2x128xf32, #tpu.memory_space<vmem>>, vector<2x128xf32>
    tpu.vector_store %arg6[%c0_12, %c0_13], %13 {strides = array<i32>} : memref<2x128xf32, #tpu.memory_space<vmem>>, vector<2x128xf32>,
    return
  }
  func.func @transform_0(%arg0: i32) -> (i32, i32) {
    %c0_i32 = arith.constant 0 : i32
    %c0_i32_0 = arith.constant 0 : i32
    return %arg0, %c0_i32 : i32, i32
  }
  func.func @transform_1(%arg0: i32) -> (i32, i32) {
    %c0_i32 = arith.constant 0 : i32
    %c0_i32_0 = arith.constant 0 : i32
    return %arg0, %c0_i32 : i32, i32
  }
  func.func @transform_2(%arg0: i32) -> (i32, i32) {
    %c0_i32 = arith.constant 0 : i32
    %c0_i32_0 = arith.constant 0 : i32
    %c0_i32_1 = arith.constant 0 : i32
    return %c0_i32, %c0_i32_0 : i32, i32
  }
  func.func @transform_3(%arg0: i32) -> (i32, i32) {
    %c0_i32 = arith.constant 0 : i32
    %c0_i32_0 = arith.constant 0 : i32
    %c0_i32_1 = arith.constant 0 : i32
    return %c0_i32, %c0_i32_0 : i32, i32
  }
  func.func @transform_4(%arg0: i32) -> (i32, i32) {
    %c0_i32 = arith.constant 0 : i32
    %c0_i32_0 = arith.constant 0 : i32
    %c0_i32_1 = arith.constant 0 : i32
    return %c0_i32, %c0_i32_0 : i32, i32
  }
  func.func @transform_5(%arg0: i32) -> (i32, i32) {
    %c0_i32 = arith.constant 0 : i32
    %c0_i32_0 = arith.constant 0 : i32
    return %arg0, %c0_i32 : i32, i32
  }
}

</mosaic_0001>

<bundles_post_ra>
// kernel: tpu_custom_call.1
= control target key start
LH: loop header
LB: loop body
LE: loop exit
PB: predicated region body
PF: predicated region fallthrough
CT: control target
= control target key end

     0   :  { %10 = vsyncpa [#allocation3], 0  ;;  %s655_s0 = inlined_call_operand.hbm [shape: bf16[16,128], index: 0, kind: input, shape index: {}]   ;;  %s656_s1 = inlined_call_operand.hbm [shape: bf16[16,64], index: 1, kind: input, shape index: {}]   ;;  %s657_s2 = inlined_call_operand.hbm [shape: bf16[128,128], index: 2, kind: input, shape index: {}]   ;;  %s658_s3 = inlined_call_operand.hbm [shape: bf16[64,128], index: 3, kind: input, shape index: {}]   ;;  %s659_s4 = inlined_call_operand.vmem [shape: f32[1,128], index: 4, kind: input, shape index: {}]   ;;  %s660_s5 = inlined_call_operand.hbm [shape: f32[2,128], index: 5, kind: output, shape index: {}]  }
   0x1   :  { %11 = vsyncpa [#allocation6], 0 }
   0x2   :  { %12 = vsyncpa [#allocation9], 0 }
   0x3   :  { %13 = vsyncpa [#allocation4], 0  ;;  %s527_s18 = smov [#allocation5]   ;;  %s528_s20 = smov [#allocation2]  }
   0x4   :  { %s31_s19 = sshll.u32 %s527_s18, 4  ;;  %s19_s21 = sshll.u32 %s528_s20, 4  ;;  %s32_s19 = int_to_ptr.vmem [resolvable:$true] %s31_s19  ;;  %s566_s21 = int_to_ptr.vmem [resolvable:$true] %s19_s21 }
   0x5   :  { %s409_s24 = scalar_lea.hbm %s656_s1, 128 }
   0x6   :  { %p410_p0 = scmp.ne.s32.totalorder %s656_s1, %s409_s24  ;;  %p413_p1 = scmp.lt.u32.totalorder %s409_s24, %s656_s1 }
   0x8   :  { %p415_p2 = pnand %p413_p1, %p410_p0 }
   0xa   :  { %418 = shalt.err (!%p415_p2)
}
   0xb   :  { %s419_s29 = scalar_lea.vmem %s32_s19, 128  ;;  %p424_p4 = scmp.lt.s32.totalorder %s32_s19, %s32_s19 }
   0xc   :  { %p420_p3 = scmp.ne.s32.totalorder %s32_s19, %s419_s29  ;;  %p425_p5 = scmp.lt.s32.totalorder %s419_s29, %s419_s29 }
   0xe   :  { %p426_p6 = por %p425_p5, %p424_p4 }
  0x10   :  { %p427_p7 = pnand %p426_p6, %p420_p3 }
  0x12   :  { %430 = shalt.err (!%p427_p7)
}
  0x13   :  { %s529_s30 = smov 64   ;;  %s530_s6 = smov 4  }
  0x14   :  { %37 = dma.hbm_to_vmem [thread:$0]  %s656_s1, 128, %s32_s19, [#allocation6], %s529_s30, %s529_s30, %s530_s6  }
  0x15   :  { %s431_s11 = scalar_lea.hbm %s655_s0, 128 }
  0x16   :  { %p432_p8 = scmp.ne.s32.totalorder %s655_s0, %s431_s11  ;;  %p435_p9 = scmp.lt.u32.totalorder %s431_s11, %s655_s0 }
  0x18   :  { %p437_p10 = pnand %p435_p9, %p432_p8 }
  0x1a   :  { %440 = shalt.err (!%p437_p10)
}
  0x1b   :  { %s441_s16 = scalar_lea.vmem %s566_s21, 128  ;;  %p446_p12 = scmp.lt.s32.totalorder %s566_s21, %s566_s21 }
  0x1c   :  { %p442_p11 = scmp.ne.s32.totalorder %s566_s21, %s441_s16  ;;  %p447_p13 = scmp.lt.s32.totalorder %s441_s16, %s441_s16 }
  0x1e   :  { %p448_p0 = por %p447_p13, %p446_p12 }
  0x20   :  { %p449_p1 = pnand %p448_p0, %p442_p11 }
  0x22   :  { %452 = shalt.err (!%p449_p1)
}
  0x23   :  { %25 = dma.hbm_to_vmem [thread:$0]  %s655_s0, 128, %s566_s21, [#allocation3], %s529_s30, %s529_s30, %s530_s6  }
  0x24   :  { %s531_s18 = smov [#allocation7]   ;;  %s532_s20 = smov [#allocation8]  }
  0x25   :  { %s43_s19 = sshll.u32 %s531_s18, 4  ;;  %s55_s22 = sshll.u32 %s532_s20, 4  ;;  %s44_s19 = int_to_ptr.vmem [resolvable:$true] %s43_s19  ;;  %s603_s22 = int_to_ptr.vmem [resolvable:$true] %s55_s22 }
  0x26   :  { %s453_s25 = scalar_lea.hbm %s657_s2, 1024 }
  0x27   :  { %p454_p2 = scmp.ne.s32.totalorder %s657_s2, %s453_s25  ;;  %p457_p3 = scmp.lt.u32.totalorder %s453_s25, %s657_s2 }
  0x29   :  { %p459_p4 = pnand %p457_p3, %p454_p2 }
  0x2b   :  { %462 = shalt.err (!%p459_p4)
}
  0x2c   :  { %s463_s0 = scalar_lea.vmem %s44_s19, 1024  ;;  %p468_p6 = scmp.lt.s32.totalorder %s44_s19, %s44_s19 }
  0x2d   :  { %p464_p5 = scmp.ne.s32.totalorder %s44_s19, %s463_s0  ;;  %p469_p7 = scmp.lt.s32.totalorder %s463_s0, %s463_s0 }
  0x2f   :  { %p470_p8 = por %p469_p7, %p468_p6 }
  0x31   :  { %p471_p9 = pnand %p470_p8, %p464_p5 }
  0x33   :  { %474 = shalt.err (!%p471_p9)
}
  0x34   :  { %49 = dma.hbm_to_vmem [thread:$0]  %s657_s2, 1024, %s44_s19, [#allocation6], %s529_s30, %s529_s30, %s530_s6  }
  0x35   :  { %s475_s10 = scalar_lea.hbm %s658_s3, 512 }
  0x36   :  { %p476_p10 = scmp.ne.s32.totalorder %s658_s3, %s475_s10  ;;  %p479_p11 = scmp.lt.u32.totalorder %s475_s10, %s658_s3 }
  0x38   :  { %p481_p12 = pnand %p479_p11, %p476_p10 }
  0x3a   :  { %484 = shalt.err (!%p481_p12)
}
  0x3b   :  { %s485_s15 = scalar_lea.vmem %s603_s22, 512  ;;  %p490_p0 = scmp.lt.s32.totalorder %s603_s22, %s603_s22 }
  0x3c   :  { %p486_p13 = scmp.ne.s32.totalorder %s603_s22, %s485_s15  ;;  %p491_p1 = scmp.lt.s32.totalorder %s485_s15, %s485_s15 }
  0x3e   :  { %p492_p2 = por %p491_p1, %p490_p0 }
  0x40   :  { %p493_p3 = pnand %p492_p2, %p486_p13 }
  0x42   :  { %496 = shalt.err (!%p493_p3)
}
  0x43   :  { %61 = dma.hbm_to_vmem [thread:$0]  %s658_s3, 512, %s603_s22, [#allocation9], %s529_s30, %s529_s30, %s530_s6  }
  0x44   :  { %519 = dma.done.wait [#allocation3], 128  }
  0x45   :  { %520 = vsyncadd [#allocation3], 4294967168 }
  0x46   :  { %521 = dma.done.wait [#allocation6], 1152  }
  0x47   :  { %522 = vsyncadd [#allocation6], 4294966144 }
  0x48   :  { %523 = dma.done.wait [#allocation9], 512  }
  0x49   :  { %524 = vsyncadd [#allocation9], 4294966784  ;;  %v533_v0 = vmov 0.0   ;;  %vm534_vm0 = vmmov 0   ;;  %v395_v1 = vld [vmem:[#allocation7] sm:$0xff]   ;;  %v396_v2 = vld [vmem:[#allocation7 + $0x8] sm:$0xff]  }
  0x4a   :  { %364 = vmatprep.subr.bf16.mxu0 %v533_v0  ;;  %352 = vmatprep.subr.bf16.mxu1 %v533_v0  ;;  %v399_v3 = vld [vmem:[#allocation8] sm:$0xff]   ;;  %v397_v4 = vld [vmem:[#allocation7 + $0x10] sm:$0xff]   ;;  %v401_v5 = vld [vmem:[#allocation8 + $0x8] sm:$0xff]   ;;  %vm134_vm1 = vcmask 523264   ;;  %s535_s6 = smov [#allocation10]   ;;  %vm301_vm2 = vcmask 1041409  }
  0x4b   :  { %360 = vmatprep.mubr.msk.bf16.mxu1 %vm534_vm0, %v533_v0  ;;  %380 = vmatprep.mubr.msk.bf16.mxu0 %vm534_vm0, %v533_v0  ;;  %v398_v6 = vld [vmem:[#allocation7 + $0x18] sm:$0xff]   ;;  %v403_v7 = vld [vmem:[#allocation8 + $0x10] sm:$0xff]   ;;  %v400_v8 = vld [vmem:[#allocation7 + $0x20] sm:$0xff]   ;;  %s311_s1 = sshll.u32 %s535_s6, 4  ;;  %s312_s1 = int_to_ptr.vmem [resolvable:$true] %s311_s1 }
  0x4c   :  { %365 = vmatpush3.bf16.msra.mxu0 %v395_v1  ;;  %353 = vmatpush3.bf16.msra.mxu1 %v399_v3  ;;  %v405_v9 = vld [vmem:[#allocation8 + $0x18] sm:$0xff]   ;;  %v402_v11 = vld [vmem:[#allocation7 + $0x28] sm:$0xff]   ;;  %v404_v12 = vld [vmem:[#allocation7 + $0x30] sm:$0xff]   ;;  %s497_s17 = scalar_lea.vmem %s312_s1, 32  ;;  %p502_p5 = scmp.lt.s32.totalorder %s312_s1, %s312_s1 }
  0x4d   :  { %366 = vmatprep.subr.bf16.mxu0 %v533_v0  ;;  %354 = vmatprep.subr.bf16.mxu1 %v533_v0  ;;  %v406_v10 = vld [vmem:[#allocation5] sm:$0xff]   ;;  %v408_v14 = vld [vmem:[#allocation2] sm:$0xff]   ;;  %p498_p4 = scmp.ne.s32.totalorder %s312_s1, %s497_s17  ;;  %p503_p6 = scmp.lt.s32.totalorder %s497_s17, %s497_s17 }
  0x4e   :  { %v407_v13 = vld [vmem:[#allocation7 + $0x38] sm:$0xff]   ;;  %v337_v39 = vld [vmem:[%s659_s4] ss:$0 sm:$0xff] }
  0x4f   :  { %p504_p7 = por %p503_p6, %p502_p5 }
  0x50   :  { %367 = vmatpush3.bf16.msra.mxu0 %v396_v2  ;;  %355 = vmatpush3.bf16.msra.mxu1 %v401_v5 }
  0x51   :  { %368 = vmatprep.subr.bf16.mxu0 %v533_v0  ;;  %356 = vmatprep.subr.bf16.mxu1 %v533_v0  ;;  %p505_p8 = pnand %p504_p7, %p498_p4 }
  0x54   :  { %369 = vmatpush3.bf16.msra.mxu0 %v397_v4  ;;  %357 = vmatpush3.bf16.msra.mxu1 %v403_v7 }
  0x55   :  { %370 = vmatprep.subr.bf16.mxu0 %v533_v0  ;;  %358 = vmatprep.subr.bf16.mxu1 %v533_v0 }
  0x58   :  { %371 = vmatpush3.bf16.msra.mxu0 %v398_v6  ;;  %359 = vmatpush3.bf16.msra.mxu1 %v405_v9 }
  0x59   :  { %372 = vmatprep.subr.bf16.mxu0 %v533_v0 }
  0x5b   :  { %361 = vmatmul.mubr.msk.bf16.vlgmr.msra.gmra.mrb[0].mxu1 %vm134_vm1, %v406_v10 }
  0x5c   :  { %373 = vmatpush3.bf16.msra.mxu0 %v400_v8 }
  0x5d   :  { %374 = vmatprep.subr.bf16.mxu0 %v533_v0 }
  0x60   :  { %375 = vmatpush3.bf16.msra.mxu0 %v402_v11 }
  0x61   :  { %376 = vmatprep.subr.bf16.mxu0 %v533_v0 }
  0x64   :  { %377 = vmatpush3.bf16.msra.mxu0 %v404_v12 }
  0x65   :  { %378 = vmatprep.subr.bf16.mxu0 %v533_v0 }
  0x68   :  { %379 = vmatpush3.bf16.msra.mxu0 %v407_v13 }
  0x6b   :  { %381 = vmatmul.mubr.bf16.vlgmr.msra.gmra.mrb[0].mxu0 %v408_v14 }
 0x12e   :  { %v172_v15 = vpop.f32.mrb[0].mxu1 }
 0x12f   :  { %v362_v16 = vpop.f32.mrb[1].mxu1 }
 0x130   :  { %v175_v17 = vpop.f32.mrb[2].mxu1 }
 0x131   :  { %v363_v18 = vpop.f32.mrb[3].mxu1 }
 0x13e   :  { %v267_v19 = vpop.f32.mrb[0].mxu0 }
 0x13f   :  { %v268_v20 = vadd.f32 %v267_v19, %v172_v15  ;;  %v382_v21 = vpop.f32.mrb[1].mxu0 }
 0x140   :  { %v270_v22 = vpop.f32.mrb[2].mxu0 }
 0x141   :  { %v274_v23 = vrot.slane %v268_v20, 4  ;;  %v271_v24 = vadd.f32 %v270_v22, %v175_v17  ;;  %v383_v25 = vpop.f32.mrb[3].mxu0 }
 0x143   :  { %v275_v26 = vadd.f32 %v274_v23, %v268_v20  ;;  %v280_v27 = vrot.slane %v271_v24, 4 }
 0x145   :  { %v276_v28 = vrot.slane %v275_v26, 2  ;;  %v281_v29 = vadd.f32 %v280_v27, %v271_v24 }
 0x147   :  { %v277_v30 = vadd.f32 %v276_v28, %v275_v26  ;;  %v282_v31 = vrot.slane %v281_v29, 2 }
 0x149   :  { %v278_v32 = vrot.slane %v277_v30, 1  ;;  %v283_v33 = vadd.f32 %v282_v31, %v281_v29 }
 0x14b   :  { %v279_v34 = vadd.f32 %v278_v32, %v277_v30  ;;  %v284_v35 = vrot.slane %v283_v33, 1 }
 0x14d   :  { %v285_v36 = vadd.f32 %v284_v35, %v283_v33  ;;  %v287_v37 = vmul.f32 0.125, %v279_v34 }
 0x14f   :  { %v288_v38 = vmul.f32 0.125, %v285_v36  ;;  %v296_v41 = vadd.f32 %v337_v39, %v287_v37 }
 0x151   :  { %v297_v40 = vadd.f32 %v337_v39, %v288_v38 }
 0x153   :  { %v300_v42 = vrot.slane %v297_v40, 7 }
 0x155   :  { %v302_v43 = vsel %vm301_vm2, %v300_v42, %v296_v41 }
 0x156   :  { %304 = vst [vmem:[#allocation10] sm:$0x3] %v302_v43 }
 0x157   :  { %508 = shalt.err (!%p505_p8)
}
 0x158   :  { %s509_s4 = scalar_lea.hbm %s660_s5, 32 }
 0x159   :  { %p510_p9 = scmp.ne.s32.totalorder %s660_s5, %s509_s4  ;;  %p513_p10 = scmp.lt.u32.totalorder %s509_s4, %s660_s5 }
 0x15b   :  { %p515_p11 = pnand %p513_p10, %p510_p9 }
 0x15d   :  { %518 = shalt.err (!%p515_p11)
}
 0x15e   :  { %314 = dma.vmem_to_hbm [thread:$0]  %s312_s1, 32, %s660_s5, [#allocation4]  }
 0x15f   :  { %525 = dma.done.wait [#allocation4], 32  }
 0x160   :  { %526 = vsyncadd [#allocation4], 4294967264 }
 0x161   :  { %318 = vsyncpa [#allocation3], 1 }
 0x162   :  { %319 = vsyncpa [#allocation6], 1 }
 0x163   :  { %320 = vsyncpa [#allocation9], 1 }
 0x164   :  { %321 = vsyncpa [#allocation4], 1 }

</bundles_post_ra>
